<compile_context>
chip_gen: v5e
topology: v5e:2x2
jax: 0.10.0
libtpu: 0.0.40
codegen_flags: <defaults>
</compile_context>

<pallas_src>
import jax
import jax.numpy as jnp
from jax.experimental import pallas as pl
from jax.experimental.pallas import tpu as pltpu


def _round_up(x, m):
    return ((x + m - 1) // m) * m


def pack_params(params, D, H, A, C, LW, BAND):
    """Pack all weights/biases into one lane-dense (3*BAND, LW) f32 buffer.

    Band i holds rows [0:LW) = fused weight i, row LW = fused bias i, rest zero.
      band 0: [wa1 | wc1]            (first layers, shared LHS = obs)
      band 1: block_diag(wa2, wc2)   (second layers on [h_a | h_c])
      band 2: [wmu -> lanes 0:A ; wv -> lanes A:A+C]  (fused output heads)
    """
    dt = jnp.float32
    W1 = (jnp.zeros((LW, LW), dt)
          .at[:D, :H].set(params["wa1"])
          .at[:D, H:2 * H].set(params["wc1"]))
    b1 = (jnp.zeros((1, LW), dt)
          .at[:, :H].set(params["ba1"])
          .at[:, H:2 * H].set(params["bc1"]))
    W2 = (jnp.zeros((LW, LW), dt)
          .at[:H, :H].set(params["wa2"])
          .at[H:2 * H, H:2 * H].set(params["wc2"]))
    b2 = (jnp.zeros((1, LW), dt)
          .at[:, :H].set(params["ba2"])
          .at[:, H:2 * H].set(params["bc2"]))
    W3 = (jnp.zeros((LW, LW), dt)
          .at[:H, :A].set(params["wmu"])
          .at[H:2 * H, A:A + C].set(params["wv"]))
    b3 = (jnp.zeros((1, LW), dt)
          .at[:, :A].set(params["bmu"])
          .at[:, A:A + C].set(params["bv"]))

    def band(W, b):
        blk = jnp.zeros((BAND, LW), dt)
        return blk.at[:LW, :].set(W).at[LW:LW + 1, :].set(b)

    return jnp.concatenate([band(W1, b1), band(W2, b2), band(W3, b3)], axis=0)


def actor_critic_forward(obs, params, *, batch_tile=256):
    """Returns (state_value, meta_action, action_mean)."""
    B, D = obs.shape
    H = params["wa2"].shape[0]
    A = params["wmu"].shape[1]
    C = params["wv"].shape[1]

    LW = _round_up(max(D, 2 * H, A + C), 128)   # lane width (all tensors 128-dense)
    BAND = LW + 8                                # weight rows + bias row + pad to 8

    TB = min(batch_tile, _round_up(B, 8))        # batch tile (multiple of 8)
    B_pad = _round_up(B, TB)

    obs_p = jnp.pad(obs.astype(jnp.float32), ((0, B_pad - B), (0, LW - D)))
    packed = pack_params(params, D, H, A, C, LW, BAND)

    def kernel(obs_ref, pk_ref, h2_ref, head_ref):
        def layer(i, x, use_tanh):
            w = pk_ref[i * BAND: i * BAND + LW, :]
            b = pk_ref[i * BAND + LW: i * BAND + LW + 1, :]
            y = jnp.dot(x, w, preferred_element_type=jnp.float32) + b
            return jnp.tanh(y) if use_tanh else y

        x = obs_ref[...]
        h1 = layer(0, x, True)                    # [tanh(obs@wa1+ba1) | tanh(obs@wc1+bc1) | 0]
        h2 = layer(1, h1, True)                   # [meta_action | critic_hidden | 0]
        h2_ref[...] = h2
        head_ref[...] = layer(2, h2, False)       # [action_mean | state_value | 0]

    grid = (B_pad // TB,)
    h2_out, head_out = pl.pallas_call(
        kernel,
        out_shape=(
            jax.ShapeDtypeStruct((B_pad, LW), jnp.float32),
            jax.ShapeDtypeStruct((B_pad, LW), jnp.float32),
        ),
        grid=grid,
        in_specs=[
            pl.BlockSpec((TB, LW), lambda i: (i, 0)),          # obs tile
            pl.BlockSpec((3 * BAND, LW), lambda i: (0, 0)),    # packed params (resident)
        ],
        out_specs=(
            pl.BlockSpec((TB, LW), lambda i: (i, 0)),
            pl.BlockSpec((TB, LW), lambda i: (i, 0)),
        ),
        compiler_params=pltpu.CompilerParams(
            dimension_semantics=("parallel",),
        ),
    )(obs_p, packed)

    meta_action = h2_out[:B, :H]
    action_mean = head_out[:B, :A]
    state_value = head_out[:B, A:A + C]
    return state_value, meta_action, action_mean


# ---------------------------------------------------------------------------
# Parameter construction (openai-baselines-style orthogonal init) + reference.
# Weights stored pre-transposed as (in_features, out_features): y = x @ W + b.
# ---------------------------------------------------------------------------
def _orthogonal(key, shape, gain):
    init = jax.nn.initializers.orthogonal(scale=gain)
    return init(key, shape, jnp.float32)


def make_params(key, input_dim, hidden_dim, actor_output_dim, critic_output_dim):
    ks = jax.random.split(key, 6)
    g = jnp.sqrt(2.0)
    return {
        # actor hidden
        "wa1": _orthogonal(ks[0], (input_dim, hidden_dim), g),
        "ba1": jnp.zeros((1, hidden_dim), jnp.float32),
        "wa2": _orthogonal(ks[1], (hidden_dim, hidden_dim), g),
        "ba2": jnp.zeros((1, hidden_dim), jnp.float32),
        # critic hidden
        "wc1": _orthogonal(ks[2], (input_dim, hidden_dim), g),
        "bc1": jnp.zeros((1, hidden_dim), jnp.float32),
        "wc2": _orthogonal(ks[3], (hidden_dim, hidden_dim), g),
        "bc2": jnp.zeros((1, hidden_dim), jnp.float32),
        # critic output
        "wv": _orthogonal(ks[4], (hidden_dim, critic_output_dim), 1.0),
        "bv": jnp.zeros((1, critic_output_dim), jnp.float32),
        # actor output (Gaussian mean head)
        "wmu": _orthogonal(ks[5], (hidden_dim, actor_output_dim), 1.0),
        "bmu": jnp.zeros((1, actor_output_dim), jnp.float32),
    }


def reference_forward(obs, p):
    ha = jnp.tanh(obs @ p["wa1"] + p["ba1"])
    meta = jnp.tanh(ha @ p["wa2"] + p["ba2"])
    hc = jnp.tanh(obs @ p["wc1"] + p["bc1"])
    hc = jnp.tanh(hc @ p["wc2"] + p["bc2"])
    value = hc @ p["wv"] + p["bv"]
    mean = meta @ p["wmu"] + p["bmu"]
    return value, meta, mean


if __name__ == "__main__":
    input_dim, hidden_dim = 32, 32
    actor_output_dim, critic_output_dim = 4, 1
    batch = 8

    key = jax.random.PRNGKey(0)
    k_obs, k_par = jax.random.split(key)
    obs = jax.random.normal(k_obs, (batch, input_dim), jnp.float32)
    params = make_params(k_par, input_dim, hidden_dim, actor_output_dim, critic_output_dim)

    value, meta, mean = jax.block_until_ready(actor_critic_forward(obs, params))

    v_ref, m_ref, mu_ref = reference_forward(obs, params)
    assert value.shape == (batch, critic_output_dim)
    assert meta.shape == (batch, hidden_dim)
    assert mean.shape == (batch, actor_output_dim)
    assert jnp.allclose(value, v_ref, atol=2e-5)
    assert jnp.allclose(meta, m_ref, atol=2e-5)
    assert jnp.allclose(mean, mu_ref, atol=2e-5)

    print("KERNEL_OK")
</pallas_src>

<mosaic_0001>
module attributes {stable_mosaic.version = 11 : i64} {
  func.func @kernel(%arg0: i32, %arg1: memref<8x128xf32, #tpu.memory_space<vmem>>, %arg2: memref<408x128xf32, #tpu.memory_space<vmem>>, %arg3: memref<8x128xf32, #tpu.memory_space<vmem>>, %arg4: memref<8x128xf32, #tpu.memory_space<vmem>>) attributes {dimension_semantics = [#tpu.dimension_semantics<parallel>], iteration_bounds = array<i64: 1>, scalar_prefetch = 0 : i64, scratch_operands = 0 : i64, tpu.core_type = #tpu.core_type<tc>, window_params = [{transform_indices = @transform_0, window_bounds = array<i64: 8, 128>}, {pipeline_mode = #tpu.pipeline_mode<synchronous>, transform_indices = @transform_1, window_bounds = array<i64: 408, 128>}, {transform_indices = @transform_2, window_bounds = array<i64: 8, 128>}, {transform_indices = @transform_3, window_bounds = array<i64: 8, 128>}]} {
    %c0 = arith.constant 0 : index
    %c0_0 = arith.constant 0 : index
    %0 = vector.load %arg1[%c0, %c0_0] : memref<8x128xf32, #tpu.memory_space<vmem>>, vector<8x128xf32>
    %c0_1 = arith.constant 0 : index
    %c0_2 = arith.constant 0 : index
    %1 = vector.load %arg2[%c0_1, %c0_2] : memref<408x128xf32, #tpu.memory_space<vmem>>, vector<128x128xf32>
    %c128 = arith.constant 128 : index
    %c0_3 = arith.constant 0 : index
    %2 = vector.load %arg2[%c128, %c0_3] : memref<408x128xf32, #tpu.memory_space<vmem>>, vector<1x128xf32>
    %cst = arith.constant dense<0.000000e+00> : vector<8x128xf32>
    %3 = tpu.matmul %0, %1, %cst {dimension_numbers = #tpu.dot_dimension_numbers<[1], [0], [0], [1], [0, 0, 1, 1], [], []>} : vector<8x128xf32>, vector<128x128xf32>, vector<8x128xf32> -> vector<8x128xf32>
    %4 = vector.broadcast %2 : vector<1x128xf32> to vector<8x128xf32>
    %5 = arith.addf %3, %4 : vector<8x128xf32>
    %6 = math.tanh %5 : vector<8x128xf32>
    %c136 = arith.constant 136 : index
    %c0_4 = arith.constant 0 : index
    %7 = vector.load %arg2[%c136, %c0_4] : memref<408x128xf32, #tpu.memory_space<vmem>>, vector<128x128xf32>
    %c264 = arith.constant 264 : index
    %c0_5 = arith.constant 0 : index
    %8 = vector.load %arg2[%c264, %c0_5] : memref<408x128xf32, #tpu.memory_space<vmem>>, vector<1x128xf32>
    %cst_6 = arith.constant dense<0.000000e+00> : vector<8x128xf32>
    %9 = tpu.matmul %6, %7, %cst_6 {dimension_numbers = #tpu.dot_dimension_numbers<[1], [0], [0], [1], [0, 0, 1, 1], [], []>} : vector<8x128xf32>, vector<128x128xf32>, vector<8x128xf32> -> vector<8x128xf32>
    %10 = vector.broadcast %8 : vector<1x128xf32> to vector<8x128xf32>
    %11 = arith.addf %9, %10 : vector<8x128xf32>
    %12 = math.tanh %11 : vector<8x128xf32>
    %c0_7 = arith.constant 0 : index
    %c0_8 = arith.constant 0 : index
    %13 = vector.load %arg3[%c0_7, %c0_8] : memref<8x128xf32, #tpu.memory_space<vmem>>, vector<8x128xf32>
    tpu.vector_store %arg3[%c0_7, %c0_8], %12 {strides = array<i32>} : memref<8x128xf32, #tpu.memory_space<vmem>>, vector<8x128xf32>,
    %c272 = arith.constant 272 : index
    %c0_9 = arith.constant 0 : index
    %14 = vector.load %arg2[%c272, %c0_9] : memref<408x128xf32, #tpu.memory_space<vmem>>, vector<128x128xf32>
    %c400 = arith.constant 400 : index
    %c0_10 = arith.constant 0 : index
    %15 = vector.load %arg2[%c400, %c0_10] : memref<408x128xf32, #tpu.memory_space<vmem>>, vector<1x128xf32>
    %cst_11 = arith.constant dense<0.000000e+00> : vector<8x128xf32>
    %16 = tpu.matmul %12, %14, %cst_11 {dimension_numbers = #tpu.dot_dimension_numbers<[1], [0], [0], [1], [0, 0, 1, 1], [], []>} : vector<8x128xf32>, vector<128x128xf32>, vector<8x128xf32> -> vector<8x128xf32>
    %17 = vector.broadcast %15 : vector<1x128xf32> to vector<8x128xf32>
    %18 = arith.addf %16, %17 : vector<8x128xf32>
    %c0_12 = arith.constant 0 : index
    %c0_13 = arith.constant 0 : index
    %19 = vector.load %arg4[%c0_12, %c0_13] : memref<8x128xf32, #tpu.memory_space<vmem>>, vector<8x128xf32>
    tpu.vector_store %arg4[%c0_12, %c0_13], %18 {strides = array<i32>} : memref<8x128xf32, #tpu.memory_space<vmem>>, vector<8x128xf32>,
    return
  }
  func.func @transform_0(%arg0: i32) -> (i32, i32) {
    %c0_i32 = arith.constant 0 : i32
    %c0_i32_0 = arith.constant 0 : i32
    return %arg0, %c0_i32 : i32, i32
  }
  func.func @transform_1(%arg0: i32) -> (i32, i32) {
    %c0_i32 = arith.constant 0 : i32
    %c0_i32_0 = arith.constant 0 : i32
    %c0_i32_1 = arith.constant 0 : i32
    return %c0_i32, %c0_i32_0 : i32, i32
  }
  func.func @transform_2(%arg0: i32) -> (i32, i32) {
    %c0_i32 = arith.constant 0 : i32
    %c0_i32_0 = arith.constant 0 : i32
    return %arg0, %c0_i32 : i32, i32
  }
  func.func @transform_3(%arg0: i32) -> (i32, i32) {
    %c0_i32 = arith.constant 0 : i32
    %c0_i32_0 = arith.constant 0 : i32
    return %arg0, %c0_i32 : i32, i32
  }
}

</mosaic_0001>

<bundles_post_ra>
// kernel: tpu_custom_call.1
= control target key start
LH: loop header
LB: loop body
LE: loop exit
PB: predicated region body
PF: predicated region fallthrough
CT: control target
= control target key end

     0   :  { %9 = vsyncpa [#allocation3], 0  ;;  %s353_s0 = inlined_call_operand.hbm [shape: f32[8,128], index: 0, kind: input, shape index: {}]   ;;  %s354_s1 = inlined_call_operand.hbm [shape: f32[408,128], index: 1, kind: input, shape index: {}]   ;;  %s355_s2 = inlined_call_operand.hbm [shape: f32[8,128], index: 2, kind: output, shape index: {0}]   ;;  %s356_s3 = inlined_call_operand.hbm [shape: f32[8,128], index: 3, kind: output, shape index: {1}]  }
   0x1   :  { %10 = vsyncpa [#allocation6], 0 }
   0x2   :  { %11 = vsyncpa [#allocation4], 0 }
   0x3   :  { %12 = vsyncpa [#allocation9], 0  ;;  %s18_s14 = sshll.u32 %s353_s0, 4  ;;  %s315_s15 = smov [#allocation2]   ;;  %s19_s14 = int_to_ptr.hbm [resolvable:$true] %s18_s14 }
   0x4   :  { %s20_s16 = sshll.u32 %s315_s15, 4  ;;  %s28_s19 = sshll.u32 %s354_s1, 4  ;;  %s21_s16 = int_to_ptr.vmem [resolvable:$true] %s20_s16  ;;  %s29_s19 = int_to_ptr.hbm [resolvable:$true] %s28_s19 }
   0x5   :  { %23 = dma.hbm_to_vmem [thread:$0]  %s19_s14, 128, %s21_s16, [#allocation3]  }
   0x6   :  { %s316_s20 = smov [#allocation5]   ;;  %s317_s22 = smov 128  }
   0x7   :  { %s30_s21 = sshll.u32 %s316_s20, 4  ;;  %s318_s23 = smov 8   ;;  %s31_s21 = int_to_ptr.vmem [resolvable:$true] %s30_s21 }
   0x8   :  { %36 = dma.hbm_to_vmem [thread:$0]  %s29_s19, 6528, %s31_s21, [#allocation6], %s317_s22, %s317_s22, %s318_s23  }
   0x9   :  { %307 = dma.done.wait [#allocation3], 128  }
   0xa   :  { %308 = vsyncadd [#allocation3], 4294967168 }
   0xb   :  { %309 = dma.done.wait [#allocation6], 6528  }
   0xc   :  { %310 = vsyncadd [#allocation6], 4294960768  ;;  %v61_v0 = vld [vmem:[#allocation5 + $0x78] sm:$0xff]  ;;  %v60_v1 = vld [vmem:[#allocation5 + $0x70] sm:$0xff]  ;;  %s319_s0 = smov [#allocation7]   ;;  %s171_s26 = sshll.u32 %s355_s2, 4  ;;  %s172_s26 = int_to_ptr.hbm [resolvable:$true] %s171_s26 }
   0xd   :  { %64 = vmatpush.msra.mxu0 %v61_v0  ;;  %v59_v2 = vld [vmem:[#allocation5 + $0x68] sm:$0xff]  ;;  %v58_v3 = vld [vmem:[#allocation5 + $0x60] sm:$0xff]  ;;  %v57_v5 = vld [vmem:[#allocation5 + $0x58] sm:$0xff]  ;;  %s169_s1 = sshll.u32 %s319_s0, 4  ;;  %s320_s27 = smov [#allocation8]   ;;  %s170_s1 = int_to_ptr.vmem [resolvable:$true] %s169_s1 }
   0xe   :  { %v100_v4 = vld [vmem:[#allocation5 + $0x100] sm:$0xff]  ;;  %v99_v6 = vld [vmem:[#allocation5 + $0xf8] sm:$0xff]  ;;  %v98_v7 = vld [vmem:[#allocation5 + $0xf0] sm:$0xff]  ;;  %s180_s28 = sshll.u32 %s320_s27, 4  ;;  %s182_s4 = sshll.u32 %s356_s3, 4  ;;  %s181_s28 = int_to_ptr.vmem [resolvable:$true] %s180_s28  ;;  %s183_s4 = int_to_ptr.hbm [resolvable:$true] %s182_s4 }
   0xf   :  { %65 = vmatpush.msra.mxu0 %v60_v1  ;;  %103 = vmatpush.msra.mxu1 %v100_v4  ;;  %v56_v8 = vld [vmem:[#allocation5 + $0x50] sm:$0xff]  ;;  %v97_v9 = vld [vmem:[#allocation5 + $0xe8] sm:$0xff]  ;;  %v96_v11 = vld [vmem:[#allocation5 + $0xe0] sm:$0xff] }
  0x10   :  { %v55_v10 = vld [vmem:[#allocation5 + $0x48] sm:$0xff]  ;;  %v54_v12 = vld [vmem:[#allocation5 + $0x40] sm:$0xff]  ;;  %v95_v13 = vld [vmem:[#allocation5 + $0xd8] sm:$0xff] }
  0x11   :  { %66 = vmatpush.msra.mxu0 %v59_v2  ;;  %104 = vmatpush.msra.mxu1 %v99_v6  ;;  %v53_v14 = vld [vmem:[#allocation5 + $0x38] sm:$0xff]  ;;  %v94_v15 = vld [vmem:[#allocation5 + $0xd0] sm:$0xff]  ;;  %v93_v17 = vld [vmem:[#allocation5 + $0xc8] sm:$0xff] }
  0x12   :  { %v52_v16 = vld [vmem:[#allocation5 + $0x30] sm:$0xff]  ;;  %v51_v18 = vld [vmem:[#allocation5 + $0x28] sm:$0xff]  ;;  %v92_v19 = vld [vmem:[#allocation5 + $0xc0] sm:$0xff] }
  0x13   :  { %67 = vmatpush.msra.mxu0 %v58_v3  ;;  %105 = vmatpush.msra.mxu1 %v98_v7  ;;  %v50_v20 = vld [vmem:[#allocation5 + $0x20] sm:$0xff]  ;;  %v91_v21 = vld [vmem:[#allocation5 + $0xb8] sm:$0xff]  ;;  %v90_v23 = vld [vmem:[#allocation5 + $0xb0] sm:$0xff] }
  0x14   :  { %v49_v22 = vld [vmem:[#allocation5 + $0x18] sm:$0xff]  ;;  %v48_v24 = vld [vmem:[#allocation5 + $0x10] sm:$0xff]  ;;  %v47_v25 = vld [vmem:[#allocation5 + $0x8] sm:$0xff] }
  0x15   :  { %68 = vmatpush.msra.mxu0 %v57_v5  ;;  %106 = vmatpush.msra.mxu1 %v97_v9  ;;  %v46_v26 = vld [vmem:[#allocation5] sm:$0xff]  ;;  %v45_v27 = vld [vmem:[#allocation2] sm:$0xff]  ;;  %v89_v28 = vld [vmem:[#allocation5 + $0xa8] sm:$0xff] }
  0x16   :  { %v88_v29 = vld [vmem:[#allocation5 + $0xa0] sm:$0xff]  ;;  %v87_v30 = vld [vmem:[#allocation5 + $0x98] sm:$0xff]  ;;  %v86_v31 = vld [vmem:[#allocation5 + $0x90] sm:$0xff] }
  0x17   :  { %69 = vmatpush.msra.mxu0 %v56_v8  ;;  %107 = vmatpush.msra.mxu1 %v96_v11  ;;  %v85_v32 = vld [vmem:[#allocation5 + $0x88] sm:$0xff]  ;;  %v139_v34 = vld [vmem:[#allocation5 + $0x180] sm:$0xff]  ;;  %v138_v35 = vld [vmem:[#allocation5 + $0x178] sm:$0xff] }
  0x18   :  { %v140_v33 = vld [vmem:[#allocation5 + $0x188] sm:$0xff]  ;;  %v137_v36 = vld [vmem:[#allocation5 + $0x170] sm:$0xff]  ;;  %v135_v38 = vld [vmem:[#allocation5 + $0x160] sm:$0xff] }
  0x19   :  { %70 = vmatpush.msra.mxu0 %v55_v10  ;;  %108 = vmatpush.msra.mxu1 %v95_v13  ;;  %v136_v37 = vld [vmem:[#allocation5 + $0x168] sm:$0xff]  ;;  %v134_v39 = vld [vmem:[#allocation5 + $0x158] sm:$0xff]  ;;  %v133_v40 = vld [vmem:[#allocation5 + $0x150] sm:$0xff] }
  0x1a   :  { %143 = vmatpush.msra.mxu2 %v140_v33  ;;  %v132_v41 = vld [vmem:[#allocation5 + $0x148] sm:$0xff]  ;;  %v131_v42 = vld [vmem:[#allocation5 + $0x140] sm:$0xff]  ;;  %v130_v43 = vld [vmem:[#allocation5 + $0x138] sm:$0xff] }
  0x1b   :  { %71 = vmatpush.msra.mxu0 %v54_v12  ;;  %109 = vmatpush.msra.mxu1 %v94_v15  ;;  %v204_v44 = vld [vmem:[#allocation5 + $0x80] ss:$0 sm:$0xff]  ;;  %v129_v48 = vld [vmem:[#allocation5 + $0x130] sm:$0xff]  ;;  %v128_v49 = vld [vmem:[#allocation5 + $0x128] sm:$0xff] }
  0x1c   :  { %144 = vmatpush.msra.mxu2 %v139_v34  ;;  %v127_v50 = vld [vmem:[#allocation5 + $0x120] sm:$0xff]  ;;  %v126_v51 = vld [vmem:[#allocation5 + $0x118] sm:$0xff]  ;;  %v125_v52 = vld [vmem:[#allocation5 + $0x110] sm:$0xff] }
  0x1d   :  { %72 = vmatpush.msra.mxu0 %v53_v14  ;;  %110 = vmatpush.msra.mxu1 %v93_v17  ;;  %v205_v53 = vld [vmem:[#allocation5 + $0x108] ss:$0 sm:$0xff]  ;;  %v206_v57 = vld [vmem:[#allocation5 + $0x190] ss:$0 sm:$0xff] }
  0x1e   :  { %145 = vmatpush.msra.mxu2 %v138_v35 }
  0x1f   :  { %73 = vmatpush.msra.mxu0 %v52_v16  ;;  %111 = vmatpush.msra.mxu1 %v92_v19 }
  0x20   :  { %146 = vmatpush.msra.mxu2 %v137_v36 }
  0x21   :  { %74 = vmatpush.msra.mxu0 %v51_v18  ;;  %112 = vmatpush.msra.mxu1 %v91_v21 }
  0x22   :  { %147 = vmatpush.msra.mxu2 %v136_v37 }
  0x23   :  { %75 = vmatpush.msra.mxu0 %v50_v20  ;;  %113 = vmatpush.msra.mxu1 %v90_v23 }
  0x24   :  { %148 = vmatpush.msra.mxu2 %v135_v38 }
  0x25   :  { %76 = vmatpush.msra.mxu0 %v49_v22  ;;  %114 = vmatpush.msra.mxu1 %v89_v28 }
  0x26   :  { %149 = vmatpush.msra.mxu2 %v134_v39 }
  0x27   :  { %77 = vmatpush.msra.mxu0 %v48_v24  ;;  %115 = vmatpush.msra.mxu1 %v88_v29 }
  0x28   :  { %150 = vmatpush.msra.mxu2 %v133_v40 }
  0x29   :  { %78 = vmatpush.msra.mxu0 %v47_v25  ;;  %116 = vmatpush.msra.mxu1 %v87_v30 }
  0x2a   :  { %151 = vmatpush.msra.mxu2 %v132_v41 }
  0x2b   :  { %79 = vmatpush.msra.mxu0 %v46_v26  ;;  %117 = vmatpush.msra.mxu1 %v86_v31 }
  0x2c   :  { %80 = vmatmul.f32.vlgmr.msra.gmra.mxu0 %v45_v27  ;;  %152 = vmatpush.msra.mxu2 %v131_v42 }
  0x2d   :  { %118 = vmatpush.msra.mxu1 %v85_v32 }
  0x2e   :  { %153 = vmatpush.msra.mxu2 %v130_v43 }
  0x30   :  { %154 = vmatpush.msra.mxu2 %v129_v48 }
  0x32   :  { %155 = vmatpush.msra.mxu2 %v128_v49 }
  0x34   :  { %156 = vmatpush.msra.mxu2 %v127_v50 }
  0x36   :  { %157 = vmatpush.msra.mxu2 %v126_v51 }
  0x38   :  { %158 = vmatpush.msra.mxu2 %v125_v52 }
  0xa9   :  { %v81_v45 = vpop.f32.mrf.mxu0 }
  0xaa   :  { %v82_v46 = vadd.f32 %v204_v44, %v81_v45 }
  0xac   :  { %207 = vtanh.f32 %v82_v46 }
  0xb2   :  { %v208_v47 = vpop.eup %207 }
  0xb3   :  { %119 = vmatmul.f32.vlgmr.msra.gmra.mxu1 %v208_v47 }
 0x130   :  { %v120_v54 = vpop.f32.mrf.mxu1 }
 0x131   :  { %v121_v55 = vadd.f32 %v205_v53, %v120_v54 }
 0x133   :  { %209 = vtanh.f32 %v121_v55 }
 0x139   :  { %v210_v56 = vpop.eup %209 }
 0x13a   :  { %124 = vst [vmem:[#allocation7] sm:$0xff] %v210_v56  ;;  %159 = vmatmul.f32.vlgmr.msra.gmra.mxu2 %v210_v56 }
 0x13b   :  { %174 = dma.vmem_to_hbm [thread:$0]  %s170_s1, 128, %s172_s26, [#allocation4]  }
 0x1bd   :  { %v160_v58 = vpop.f32.mrf.mxu2 }
 0x1be   :  { %v161_v59 = vadd.f32 %v206_v57, %v160_v58 }
 0x1c0   :  { %163 = vst [vmem:[#allocation8] sm:$0xff] %v161_v59 }
 0x1c1   :  { %185 = dma.vmem_to_hbm [thread:$0]  %s181_s28, 128, %s183_s4, [#allocation9]  }
 0x1c2   :  { %311 = dma.done.wait [#allocation4], 128  }
 0x1c3   :  { %312 = vsyncadd [#allocation4], 4294967168 }
 0x1c4   :  { %313 = dma.done.wait [#allocation9], 128  }
 0x1c5   :  { %314 = vsyncadd [#allocation9], 4294967168 }
 0x1c6   :  { %194 = vsyncpa [#allocation3], 1 }
 0x1c7   :  { %195 = vsyncpa [#allocation6], 1 }
 0x1c8   :  { %196 = vsyncpa [#allocation4], 1 }
 0x1c9   :  { %197 = vsyncpa [#allocation9], 1 }

</bundles_post_ra>
